<compile_context>
chip_gen: v7x
topology: tpu7x:2x2x1
jax: 0.10.0
libtpu: 0.0.40
codegen_flags: <defaults>
</compile_context>

<pallas_src>
import functools

import jax
import jax.numpy as jnp
from jax.experimental import pallas as pl
from jax.experimental.pallas import tpu as pltpu


def _round_up(x, m):
    return ((x + m - 1) // m) * m


def _align_kernel(traj_ref, obs_ref,
                  w1_ref, b1_ref, w2a_ref,
                  a1t_ref, c1f_ref,
                  a2_ref, c2_ref, a3_ref, c3_ref,
                  out_ref):
    # ---- prompt path (batch independent, tiny; recomputed per grid step so
    #      the "parallel" batch axis stays correct on megacore) ----
    h = jnp.dot(obs_ref[...], w1_ref[...], preferred_element_type=jnp.float32) + b1_ref[...]
    h = jnp.maximum(h, 0.0)                                           # (1, 256) f32
    # folded (prompt @ a1_bot): single 256x256 MXU push
    pvec = jnp.dot(h.astype(w2a_ref.dtype), w2a_ref[...],
                   preferred_element_type=jnp.float32)                # (1, 256)

    # ---- alignment net (concat folded into a split matmul) ----
    h1 = (jnp.dot(traj_ref[...], a1t_ref[...], preferred_element_type=jnp.float32)
          + pvec + c1f_ref[...])                                      # (TB, 256)
    h1 = jnp.maximum(h1, 0.0)

    h2 = jnp.dot(h1.astype(a2_ref.dtype), a2_ref[...],
                 preferred_element_type=jnp.float32) + c2_ref[...]    # (TB, 128)
    h2 = jnp.maximum(h2, 0.0)

    # a3 is zero-padded to 128 output lanes -> unmasked lane-dense store.
    out_ref[...] = (jnp.dot(h2.astype(a3_ref.dtype), a3_ref[...],
                            preferred_element_type=jnp.float32)
                    + c3_ref[...]).astype(out_ref.dtype)              # (TB, 128)


def fold_params(params):
    """One-time offline fold of the parameter set (see header)."""
    D = params["w1"].shape[0]
    a1_top = params["a1"][:D, :]                       # (D, 256)   traj part
    a1_bot = params["a1"][D:, :]                       # (D, 256)   prompt part
    w2a = params["w2"] @ a1_bot                        # (256, 256) folded prompt weights
    c1f = params["c1"] + params["b2"] @ a1_bot         # (1, 256)   folded bias
    a3p = jnp.pad(params["a3"], ((0, 0), (0, 127)))    # (128, 128) lane-dense head
    c3p = jnp.pad(params["c3"], ((0, 0), (0, 127)))    # (1, 128)
    return dict(w1=params["w1"], b1=params["b1"],
                w2a=w2a, a1_top=a1_top, c1f=c1f,
                a2=params["a2"], c2=params["c2"], a3p=a3p, c3p=c3p)


@functools.partial(jax.jit, static_argnames=("block_b", "compute_dtype"))
def adaptive_sinkhorn_align(trajectory_embeddings, current_observation, folded,
                            *, block_b=512, compute_dtype=jnp.float32):
    """trajectory_embeddings: (B, D); current_observation: (D,); folded = fold_params(params)."""
    B, D = trajectory_embeddings.shape

    # Row block: multiple of 8, capped at block_b; pad the batch to a multiple.
    tb = min(block_b, _round_up(B, 8))
    b_pad = _round_up(B, tb)
    traj = trajectory_embeddings
    if b_pad != B:
        traj = jnp.pad(traj, ((0, b_pad - B), (0, 0)))
    traj = traj.astype(compute_dtype)
    obs = current_observation.reshape(1, D).astype(compute_dtype)

    # Matmul operands in compute_dtype (f32 default; bf16 halves weight DMA on
    # v6e/v7x); biases stay f32, every dot accumulates in f32.
    w1 = folded["w1"].astype(compute_dtype)
    w2a = folded["w2a"].astype(compute_dtype)
    a1t = folded["a1_top"].astype(compute_dtype)
    a2 = folded["a2"].astype(compute_dtype)
    a3p = folded["a3p"].astype(compute_dtype)
    b1, c1f, c2, c3p = folded["b1"], folded["c1f"], folded["c2"], folded["c3p"]

    inputs = (traj, obs, w1, b1, w2a, a1t, c1f, a2, c2, a3p, c3p)

    rep = lambda i: (0, 0)          # weights / obs: same block every grid step
    row = lambda i: (i, 0)          # batch-tiled arrays
    in_specs = [
        pl.BlockSpec((tb, D), row),          # traj
        pl.BlockSpec((1, D), rep),           # obs
        pl.BlockSpec((D, 256), rep),         # w1
        pl.BlockSpec((1, 256), rep),         # b1
        pl.BlockSpec((256, 256), rep),       # w2a (folded)
        pl.BlockSpec((D, 256), rep),         # a1_top
        pl.BlockSpec((1, 256), rep),         # c1f (folded)
        pl.BlockSpec((256, 128), rep),       # a2
        pl.BlockSpec((1, 128), rep),         # c2
        pl.BlockSpec((128, 128), rep),       # a3 (lane padded)
        pl.BlockSpec((1, 128), rep),         # c3 (lane padded)
    ]
    out_spec = pl.BlockSpec((tb, 128), row)

    flops = int(2 * b_pad * (D * 256 + 256 * 128 + 128 * 128)          # batch part
                + 2 * (b_pad // tb) * (D * 256 + 256 * 256))           # prompt per step
    bytes_accessed = int(sum(x.size * x.dtype.itemsize for x in inputs)
                         + b_pad * 128 * 4)

    out = pl.pallas_call(
        _align_kernel,
        out_shape=jax.ShapeDtypeStruct((b_pad, 128), jnp.float32),
        grid=(b_pad // tb,),
        in_specs=in_specs,
        out_specs=out_spec,
        compiler_params=pltpu.CompilerParams(
            dimension_semantics=("parallel",)),
        cost_estimate=pl.CostEstimate(flops=flops, transcendentals=0,
                                      bytes_accessed=bytes_accessed),
    )(*inputs)

    # column 0 holds the scores; replicate torch .squeeze() (B==1 -> scalar)
    return jnp.squeeze(out[:B, :1])


def init_params(key, state_dim):
    """Deterministic synthetic parameters (PyTorch nn.Linear shapes, stored transposed)."""
    ks = jax.random.split(key, 10)

    def lin(k, fan_in, fan_out):
        bound = 1.0 / jnp.sqrt(fan_in)
        kw, kb = jax.random.split(k)
        w = jax.random.uniform(kw, (fan_in, fan_out), jnp.float32, -bound, bound)
        b = jax.random.uniform(kb, (1, fan_out), jnp.float32, -bound, bound)
        return w, b

    w1, b1 = lin(ks[0], state_dim, 256)        # prompt_generator[0]
    w2, b2 = lin(ks[1], 256, state_dim)        # prompt_generator[2]
    a1, c1 = lin(ks[2], 2 * state_dim, 256)    # alignment_net[0]
    a2, c2 = lin(ks[3], 256, 128)              # alignment_net[2]
    a3, c3 = lin(ks[4], 128, 1)                # alignment_net[4]
    return dict(w1=w1, b1=b1, w2=w2, b2=b2,
                a1=a1, c1=c1, a2=a2, c2=c2, a3=a3, c3=c3)


def _reference(trajectory_embeddings, current_observation, p):
    """Pure-JAX reference replicating the PyTorch forward (unfolded params)."""
    h = jnp.maximum(current_observation @ p["w1"] + p["b1"][0], 0.0)
    prompt = h @ p["w2"] + p["b2"][0]
    B = trajectory_embeddings.shape[0]
    combined = jnp.concatenate(
        [trajectory_embeddings, jnp.broadcast_to(prompt, (B, prompt.shape[-1]))], axis=-1)
    h1 = jnp.maximum(combined @ p["a1"] + p["c1"][0], 0.0)
    h2 = jnp.maximum(h1 @ p["a2"] + p["c2"][0], 0.0)
    return (h2 @ p["a3"] + p["c3"][0]).squeeze()


if __name__ == "__main__":
    state_dim = 32
    batch = 8

    key = jax.random.PRNGKey(0)
    k_traj, k_obs, k_params = jax.random.split(key, 3)

    trajectory_embeddings = jax.random.normal(k_traj, (batch, state_dim), jnp.float32)
    current_observation = jax.random.normal(k_obs, (state_dim,), jnp.float32)
    params = init_params(k_params, state_dim)
    folded = fold_params(params)

    out = adaptive_sinkhorn_align(trajectory_embeddings, current_observation, folded)
    out = jax.block_until_ready(out)

    ref = _reference(trajectory_embeddings, current_observation, params)
    assert out.shape == (batch,), out.shape
    # Tolerance covers the (mathematically exact) prompt-path fold's different
    # floating-point accumulation order.
    assert jnp.allclose(out, ref, atol=1e-3, rtol=1e-3), (out, ref)

    print("KERNEL_OK")
</pallas_src>

<mosaic_0001>
module attributes {stable_mosaic.version = 11 : i64} {
  func.func @_align_kernel(%arg0: i32, %arg1: memref<8x32xf32, #tpu.memory_space<vmem>>, %arg2: memref<1x32xf32, #tpu.memory_space<vmem>>, %arg3: memref<32x256xf32, #tpu.memory_space<vmem>>, %arg4: memref<1x256xf32, #tpu.memory_space<vmem>>, %arg5: memref<256x256xf32, #tpu.memory_space<vmem>>, %arg6: memref<32x256xf32, #tpu.memory_space<vmem>>, %arg7: memref<1x256xf32, #tpu.memory_space<vmem>>, %arg8: memref<256x128xf32, #tpu.memory_space<vmem>>, %arg9: memref<1x128xf32, #tpu.memory_space<vmem>>, %arg10: memref<128x128xf32, #tpu.memory_space<vmem>>, %arg11: memref<1x128xf32, #tpu.memory_space<vmem>>, %arg12: memref<8x128xf32, #tpu.memory_space<vmem>>) attributes {dimension_semantics = [#tpu.dimension_semantics<parallel>], iteration_bounds = array<i64: 1>, scalar_prefetch = 0 : i64, scratch_operands = 0 : i64, tpu.core_type = #tpu.core_type<tc>, window_params = [{transform_indices = @transform_0, window_bounds = array<i64: 8, 32>}, {pipeline_mode = #tpu.pipeline_mode<synchronous>, transform_indices = @transform_1, window_bounds = array<i64: 1, 32>}, {pipeline_mode = #tpu.pipeline_mode<synchronous>, transform_indices = @transform_2, window_bounds = array<i64: 32, 256>}, {pipeline_mode = #tpu.pipeline_mode<synchronous>, transform_indices = @transform_3, window_bounds = array<i64: 1, 256>}, {pipeline_mode = #tpu.pipeline_mode<synchronous>, transform_indices = @transform_4, window_bounds = array<i64: 256, 256>}, {pipeline_mode = #tpu.pipeline_mode<synchronous>, transform_indices = @transform_5, window_bounds = array<i64: 32, 256>}, {pipeline_mode = #tpu.pipeline_mode<synchronous>, transform_indices = @transform_6, window_bounds = array<i64: 1, 256>}, {pipeline_mode = #tpu.pipeline_mode<synchronous>, transform_indices = @transform_7, window_bounds = array<i64: 256, 128>}, {pipeline_mode = #tpu.pipeline_mode<synchronous>, transform_indices = @transform_8, window_bounds = array<i64: 1, 128>}, {pipeline_mode = #tpu.pipeline_mode<synchronous>, transform_indices = @transform_9, window_bounds = array<i64: 128, 128>}, {pipeline_mode = #tpu.pipeline_mode<synchronous>, transform_indices = @transform_10, window_bounds = array<i64: 1, 128>}, {transform_indices = @transform_11, window_bounds = array<i64: 8, 128>}]} {
    %c0 = arith.constant 0 : index
    %c0_0 = arith.constant 0 : index
    %0 = vector.load %arg2[%c0, %c0_0] : memref<1x32xf32, #tpu.memory_space<vmem>>, vector<1x32xf32>
    %c0_1 = arith.constant 0 : index
    %c0_2 = arith.constant 0 : index
    %1 = vector.load %arg3[%c0_1, %c0_2] : memref<32x256xf32, #tpu.memory_space<vmem>>, vector<32x256xf32>
    %cst = arith.constant dense<0.000000e+00> : vector<1x256xf32>
    %2 = tpu.matmul %0, %1, %cst {dimension_numbers = #tpu.dot_dimension_numbers<[1], [0], [0], [1], [0, 0, 1, 1], [], []>} : vector<1x32xf32>, vector<32x256xf32>, vector<1x256xf32> -> vector<1x256xf32>
    %c0_3 = arith.constant 0 : index
    %c0_4 = arith.constant 0 : index
    %3 = vector.load %arg4[%c0_3, %c0_4] : memref<1x256xf32, #tpu.memory_space<vmem>>, vector<1x256xf32>
    %4 = arith.addf %2, %3 : vector<1x256xf32>
    %cst_5 = arith.constant 0.000000e+00 : f32
    %5 = vector.broadcast %cst_5 : f32 to vector<1x256xf32>
    %6 = arith.maximumf %4, %5 : vector<1x256xf32>
    %c0_6 = arith.constant 0 : index
    %c0_7 = arith.constant 0 : index
    %7 = vector.load %arg5[%c0_6, %c0_7] : memref<256x256xf32, #tpu.memory_space<vmem>>, vector<256x256xf32>
    %cst_8 = arith.constant dense<0.000000e+00> : vector<1x256xf32>
    %8 = tpu.matmul %6, %7, %cst_8 {dimension_numbers = #tpu.dot_dimension_numbers<[1], [0], [0], [1], [0, 0, 1, 1], [], []>} : vector<1x256xf32>, vector<256x256xf32>, vector<1x256xf32> -> vector<1x256xf32>
    %c0_9 = arith.constant 0 : index
    %c0_10 = arith.constant 0 : index
    %9 = vector.load %arg1[%c0_9, %c0_10] : memref<8x32xf32, #tpu.memory_space<vmem>>, vector<8x32xf32>
    %c0_11 = arith.constant 0 : index
    %c0_12 = arith.constant 0 : index
    %10 = vector.load %arg6[%c0_11, %c0_12] : memref<32x256xf32, #tpu.memory_space<vmem>>, vector<32x256xf32>
    %cst_13 = arith.constant dense<0.000000e+00> : vector<8x256xf32>
    %11 = tpu.matmul %9, %10, %cst_13 {dimension_numbers = #tpu.dot_dimension_numbers<[1], [0], [0], [1], [0, 0, 1, 1], [], []>} : vector<8x32xf32>, vector<32x256xf32>, vector<8x256xf32> -> vector<8x256xf32>
    %12 = vector.broadcast %8 : vector<1x256xf32> to vector<8x256xf32>
    %13 = arith.addf %11, %12 : vector<8x256xf32>
    %c0_14 = arith.constant 0 : index
    %c0_15 = arith.constant 0 : index
    %14 = vector.load %arg7[%c0_14, %c0_15] : memref<1x256xf32, #tpu.memory_space<vmem>>, vector<1x256xf32>
    %15 = vector.broadcast %14 : vector<1x256xf32> to vector<8x256xf32>
    %16 = arith.addf %13, %15 : vector<8x256xf32>
    %cst_16 = arith.constant 0.000000e+00 : f32
    %17 = vector.broadcast %cst_16 : f32 to vector<8x256xf32>
    %18 = arith.maximumf %16, %17 : vector<8x256xf32>
    %c0_17 = arith.constant 0 : index
    %c0_18 = arith.constant 0 : index
    %19 = vector.load %arg8[%c0_17, %c0_18] : memref<256x128xf32, #tpu.memory_space<vmem>>, vector<256x128xf32>
    %cst_19 = arith.constant dense<0.000000e+00> : vector<8x128xf32>
    %20 = tpu.matmul %18, %19, %cst_19 {dimension_numbers = #tpu.dot_dimension_numbers<[1], [0], [0], [1], [0, 0, 1, 1], [], []>} : vector<8x256xf32>, vector<256x128xf32>, vector<8x128xf32> -> vector<8x128xf32>
    %c0_20 = arith.constant 0 : index
    %c0_21 = arith.constant 0 : index
    %21 = vector.load %arg9[%c0_20, %c0_21] : memref<1x128xf32, #tpu.memory_space<vmem>>, vector<1x128xf32>
    %22 = vector.broadcast %21 : vector<1x128xf32> to vector<8x128xf32>
    %23 = arith.addf %20, %22 : vector<8x128xf32>
    %cst_22 = arith.constant 0.000000e+00 : f32
    %24 = vector.broadcast %cst_22 : f32 to vector<8x128xf32>
    %25 = arith.maximumf %23, %24 : vector<8x128xf32>
    %c0_23 = arith.constant 0 : index
    %c0_24 = arith.constant 0 : index
    %26 = vector.load %arg10[%c0_23, %c0_24] : memref<128x128xf32, #tpu.memory_space<vmem>>, vector<128x128xf32>
    %cst_25 = arith.constant dense<0.000000e+00> : vector<8x128xf32>
    %27 = tpu.matmul %25, %26, %cst_25 {dimension_numbers = #tpu.dot_dimension_numbers<[1], [0], [0], [1], [0, 0, 1, 1], [], []>} : vector<8x128xf32>, vector<128x128xf32>, vector<8x128xf32> -> vector<8x128xf32>
    %c0_26 = arith.constant 0 : index
    %c0_27 = arith.constant 0 : index
    %28 = vector.load %arg11[%c0_26, %c0_27] : memref<1x128xf32, #tpu.memory_space<vmem>>, vector<1x128xf32>
    %29 = vector.broadcast %28 : vector<1x128xf32> to vector<8x128xf32>
    %30 = arith.addf %27, %29 : vector<8x128xf32>
    %c0_28 = arith.constant 0 : index
    %c0_29 = arith.constant 0 : index
    %31 = vector.load %arg12[%c0_28, %c0_29] : memref<8x128xf32, #tpu.memory_space<vmem>>, vector<8x128xf32>
    tpu.vector_store %arg12[%c0_28, %c0_29], %30 {strides = array<i32>} : memref<8x128xf32, #tpu.memory_space<vmem>>, vector<8x128xf32>,
    return
  }
  func.func @transform_0(%arg0: i32) -> (i32, i32) {
    %c0_i32 = arith.constant 0 : i32
    %c0_i32_0 = arith.constant 0 : i32
    return %arg0, %c0_i32 : i32, i32
  }
  func.func @transform_1(%arg0: i32) -> (i32, i32) {
    %c0_i32 = arith.constant 0 : i32
    %c0_i32_0 = arith.constant 0 : i32
    %c0_i32_1 = arith.constant 0 : i32
    return %c0_i32, %c0_i32_0 : i32, i32
  }
  func.func @transform_2(%arg0: i32) -> (i32, i32) {
    %c0_i32 = arith.constant 0 : i32
    %c0_i32_0 = arith.constant 0 : i32
    %c0_i32_1 = arith.constant 0 : i32
    return %c0_i32, %c0_i32_0 : i32, i32
  }
  func.func @transform_3(%arg0: i32) -> (i32, i32) {
    %c0_i32 = arith.constant 0 : i32
    %c0_i32_0 = arith.constant 0 : i32
    %c0_i32_1 = arith.constant 0 : i32
    return %c0_i32, %c0_i32_0 : i32, i32
  }
  func.func @transform_4(%arg0: i32) -> (i32, i32) {
    %c0_i32 = arith.constant 0 : i32
    %c0_i32_0 = arith.constant 0 : i32
    %c0_i32_1 = arith.constant 0 : i32
    return %c0_i32, %c0_i32_0 : i32, i32
  }
  func.func @transform_5(%arg0: i32) -> (i32, i32) {
    %c0_i32 = arith.constant 0 : i32
    %c0_i32_0 = arith.constant 0 : i32
    %c0_i32_1 = arith.constant 0 : i32
    return %c0_i32, %c0_i32_0 : i32, i32
  }
  func.func @transform_6(%arg0: i32) -> (i32, i32) {
    %c0_i32 = arith.constant 0 : i32
    %c0_i32_0 = arith.constant 0 : i32
    %c0_i32_1 = arith.constant 0 : i32
    return %c0_i32, %c0_i32_0 : i32, i32
  }
  func.func @transform_7(%arg0: i32) -> (i32, i32) {
    %c0_i32 = arith.constant 0 : i32
    %c0_i32_0 = arith.constant 0 : i32
    %c0_i32_1 = arith.constant 0 : i32
    return %c0_i32, %c0_i32_0 : i32, i32
  }
  func.func @transform_8(%arg0: i32) -> (i32, i32) {
    %c0_i32 = arith.constant 0 : i32
    %c0_i32_0 = arith.constant 0 : i32
    %c0_i32_1 = arith.constant 0 : i32
    return %c0_i32, %c0_i32_0 : i32, i32
  }
  func.func @transform_9(%arg0: i32) -> (i32, i32) {
    %c0_i32 = arith.constant 0 : i32
    %c0_i32_0 = arith.constant 0 : i32
    %c0_i32_1 = arith.constant 0 : i32
    return %c0_i32, %c0_i32_0 : i32, i32
  }
  func.func @transform_10(%arg0: i32) -> (i32, i32) {
    %c0_i32 = arith.constant 0 : i32
    %c0_i32_0 = arith.constant 0 : i32
    %c0_i32_1 = arith.constant 0 : i32
    return %c0_i32, %c0_i32_0 : i32, i32
  }
  func.func @transform_11(%arg0: i32) -> (i32, i32) {
    %c0_i32 = arith.constant 0 : i32
    %c0_i32_0 = arith.constant 0 : i32
    return %arg0, %c0_i32 : i32, i32
  }
}

</mosaic_0001>

<bundles_post_ra>
// kernel: adaptive_sinkhorn_align.1
= control target key start
LH: loop header
LB: loop body
LE: loop exit
PB: predicated region body
PF: predicated region fallthrough
CT: control target
= control target key end

     0   :  { %16 = vsyncpa [#allocation3], 0  ;;  %s1227_s0 = inlined_call_operand.hbm [shape: f32[8,32], index: 0, kind: input, shape index: {}]   ;;  %s1228_s1 = inlined_call_operand.vmem [shape: f32[1,32], index: 1, kind: input, shape index: {}]   ;;  %s1229_s2 = inlined_call_operand.hbm [shape: f32[32,256], index: 2, kind: input, shape index: {}]   ;;  %s1230_s3 = inlined_call_operand.vmem [shape: f32[1,256], index: 3, kind: input, shape index: {}]   ;;  %s1231_s4 = inlined_call_operand.hbm [shape: f32[256,256], index: 4, kind: input, shape index: {}]   ;;  %s1232_s5 = inlined_call_operand.hbm [shape: f32[32,256], index: 5, kind: input, shape index: {}]   ;;  %s1233_s6 = inlined_call_operand.vmem [shape: f32[1,256], index: 6, kind: input, shape index: {}]   ;;  %s1234_s7 = inlined_call_operand.hbm [shape: f32[256,128], index: 7, kind: input, shape index: {}]   ;;  %s1235_s8 = inlined_call_operand.vmem [shape: f32[1,128], index: 8, kind: input, shape index: {}]   ;;  %s1236_s9 = inlined_call_operand.hbm [shape: f32[128,128], index: 9, kind: input, shape index: {}]   ;;  %s1237_s10 = inlined_call_operand.vmem [shape: f32[1,128], index: 10, kind: input, shape index: {}]   ;;  %s1238_s11 = inlined_call_operand.vmem [shape: f32[8,128], index: 11, kind: output, shape index: {}]  }
   0x1   :  { %17 = vsyncpa [#allocation5], 0 }
   0x2   :  { %18 = vsyncpa [#allocation8], 0 }
   0x3   :  { %19 = vsyncpa [#allocation11], 0  ;;  %s1050_s17 = smov [#allocation4]   ;;  %s910_s21 = scalar_lea.hbm %s1229_s2, 1024 }
   0x4   :  { %s37_s18 = sshll.u32 %s1050_s17, 4  ;;  %p911_p0 = scmp.ne.s32.totalorder %s1229_s2, %s910_s21  ;;  %s38_s18 = int_to_ptr.vmem [resolvable:$true] %s37_s18 }
   0x5   :  { %p914_p1 = scmp.lt.u32.totalorder %s910_s21, %s1229_s2 }
   0x7   :  { %p916_p2 = pnand %p914_p1, %p911_p0 }
   0x9   :  { %919 = shalt.err (!%p916_p2)
}
   0xa   :  { %s920_s26 = scalar_lea.vmem %s38_s18, 1024  ;;  %p925_p4 = scmp.lt.s32.totalorder %s38_s18, %s38_s18 }
   0xb   :  { %p921_p3 = scmp.ne.s32.totalorder %s38_s18, %s920_s26  ;;  %p926_p5 = scmp.lt.s32.totalorder %s920_s26, %s920_s26 }
   0xd   :  { %p927_p6 = por %p926_p5, %p925_p4 }
   0xf   :  { %p928_p7 = pnand %p927_p6, %p921_p3 }
  0x11   :  { %931 = shalt.err (!%p928_p7)
}
  0x12   :  { %s1051_s27 = smov 256   ;;  %s1052_s28 = smov 16  }
  0x13   :  { %43 = dma.hbm_to_vmem [thread:$0]  %s1229_s2, 1024, %s38_s18, [#allocation5], %s1051_s27, %s1051_s27, %s1052_s28  }
  0x14   :  { %s1053_s12 = smov [#allocation7]   ;;  %s1054_s14 = smov [#allocation2]  }
  0x15   :  { %s63_s13 = sshll.u32 %s1053_s12, 4  ;;  %s26_s15 = sshll.u32 %s1054_s14, 4  ;;  %s64_s13 = int_to_ptr.vmem [resolvable:$true] %s63_s13  ;;  %s27_s15 = int_to_ptr.vmem [resolvable:$true] %s26_s15 }
  0x16   :  { %s932_s19 = scalar_lea.hbm %s1232_s5, 1024 }
  0x17   :  { %p933_p8 = scmp.ne.s32.totalorder %s1232_s5, %s932_s19  ;;  %p936_p9 = scmp.lt.u32.totalorder %s932_s19, %s1232_s5 }
  0x19   :  { %p938_p10 = pnand %p936_p9, %p933_p8 }
  0x1b   :  { %941 = shalt.err (!%p938_p10)
}
  0x1c   :  { %s942_s2 = scalar_lea.vmem %s64_s13, 1024  ;;  %p947_p12 = scmp.lt.s32.totalorder %s64_s13, %s64_s13 }
  0x1d   :  { %p943_p11 = scmp.ne.s32.totalorder %s64_s13, %s942_s2  ;;  %p948_p13 = scmp.lt.s32.totalorder %s942_s2, %s942_s2 }
  0x1f   :  { %p949_p0 = por %p948_p13, %p947_p12 }
  0x21   :  { %p950_p1 = pnand %p949_p0, %p943_p11 }
  0x23   :  { %953 = shalt.err (!%p950_p1)
}
  0x24   :  { %69 = dma.hbm_to_vmem [thread:$0]  %s1232_s5, 1024, %s64_s13, [#allocation8], %s1051_s27, %s1051_s27, %s1052_s28  }
  0x25   :  { %s954_s29 = scalar_lea.hbm %s1227_s0, 128 }
  0x26   :  { %p955_p2 = scmp.ne.s32.totalorder %s1227_s0, %s954_s29  ;;  %p958_p3 = scmp.lt.u32.totalorder %s954_s29, %s1227_s0 }
  0x28   :  { %p960_p4 = pnand %p958_p3, %p955_p2 }
  0x2a   :  { %963 = shalt.err (!%p960_p4)
}
  0x2b   :  { %s964_s17 = scalar_lea.vmem %s27_s15, 128  ;;  %p969_p6 = scmp.lt.s32.totalorder %s27_s15, %s27_s15 }
  0x2c   :  { %p965_p5 = scmp.ne.s32.totalorder %s27_s15, %s964_s17  ;;  %p970_p7 = scmp.lt.s32.totalorder %s964_s17, %s964_s17 }
  0x2e   :  { %p971_p8 = por %p970_p7, %p969_p6 }
  0x30   :  { %p972_p9 = pnand %p971_p8, %p965_p5 }
  0x32   :  { %975 = shalt.err (!%p972_p9)
}
  0x33   :  { %29 = dma.hbm_to_vmem [thread:$0]  %s1227_s0, 128, %s27_s15, [#allocation3]  }
  0x34   :  { %s1055_s19 = smov [#allocation6]   ;;  %s1056_s21 = smov [#allocation9]  }
  0x35   :  { %s51_s20 = sshll.u32 %s1055_s19, 4  ;;  %s77_s22 = sshll.u32 %s1056_s21, 4  ;;  %s52_s20 = int_to_ptr.vmem [resolvable:$true] %s51_s20  ;;  %s78_s22 = int_to_ptr.vmem [resolvable:$true] %s77_s22 }
  0x36   :  { %s976_s18 = scalar_lea.hbm %s1231_s4, 8192 }
  0x37   :  { %p977_p10 = scmp.ne.s32.totalorder %s1231_s4, %s976_s18  ;;  %p980_p11 = scmp.lt.u32.totalorder %s976_s18, %s1231_s4 }
  0x39   :  { %p982_p12 = pnand %p980_p11, %p977_p10 }
  0x3b   :  { %985 = shalt.err (!%p982_p12)
}
  0x3c   :  { %s986_s0 = scalar_lea.vmem %s52_s20, 8192  ;;  %p991_p0 = scmp.lt.s32.totalorder %s52_s20, %s52_s20 }
  0x3d   :  { %p987_p13 = scmp.ne.s32.totalorder %s52_s20, %s986_s0  ;;  %p992_p1 = scmp.lt.s32.totalorder %s986_s0, %s986_s0 }
  0x3f   :  { %p993_p2 = por %p992_p1, %p991_p0 }
  0x41   :  { %p994_p3 = pnand %p993_p2, %p987_p13 }
  0x43   :  { %997 = shalt.err (!%p994_p3)
}
  0x44   :  { %57 = dma.hbm_to_vmem [thread:$0]  %s1231_s4, 8192, %s52_s20, [#allocation5], %s1051_s27, %s1051_s27, %s1052_s28  }
  0x45   :  { %s998_s16 = scalar_lea.hbm %s1234_s7, 4096 }
  0x46   :  { %p999_p4 = scmp.ne.s32.totalorder %s1234_s7, %s998_s16  ;;  %p1002_p5 = scmp.lt.u32.totalorder %s998_s16, %s1234_s7 }
  0x48   :  { %p1004_p6 = pnand %p1002_p5, %p999_p4 }
  0x4a   :  { %1007 = shalt.err (!%p1004_p6)
}
  0x4b   :  { %s1008_s21 = scalar_lea.vmem %s78_s22, 4096  ;;  %p1013_p8 = scmp.lt.s32.totalorder %s78_s22, %s78_s22 }
  0x4c   :  { %p1009_p7 = scmp.ne.s32.totalorder %s78_s22, %s1008_s21  ;;  %p1014_p9 = scmp.lt.s32.totalorder %s1008_s21, %s1008_s21 }
  0x4e   :  { %p1015_p10 = por %p1014_p9, %p1013_p8 }
  0x50   :  { %p1016_p11 = pnand %p1015_p10, %p1009_p7 }
  0x52   :  { %1019 = shalt.err (!%p1016_p11)
}
  0x53   :  { %s1057_s4 = smov 128   ;;  %s1058_s27 = smov 8  }
  0x54   :  { %83 = dma.hbm_to_vmem [thread:$0]  %s1234_s7, 4096, %s78_s22, [#allocation8], %s1057_s4, %s1057_s4, %s1058_s27  }
  0x55   :  { %s1059_s23 = smov [#allocation10]   ;;  %s1020_s25 = scalar_lea.hbm %s1236_s9, 2048 }
  0x56   :  { %s91_s2 = sshll.u32 %s1059_s23, 4  ;;  %p1021_p12 = scmp.ne.s32.totalorder %s1236_s9, %s1020_s25  ;;  %s92_s2 = int_to_ptr.vmem [resolvable:$true] %s91_s2 }
  0x57   :  { %p1024_p13 = scmp.lt.u32.totalorder %s1020_s25, %s1236_s9 }
  0x59   :  { %p1026_p0 = pnand %p1024_p13, %p1021_p12 }
  0x5b   :  { %1029 = shalt.err (!%p1026_p0)
}
  0x5c   :  { %s1030_s30 = scalar_lea.vmem %s92_s2, 2048  ;;  %p1035_p2 = scmp.lt.s32.totalorder %s92_s2, %s92_s2 }
  0x5d   :  { %p1031_p1 = scmp.ne.s32.totalorder %s92_s2, %s1030_s30  ;;  %p1036_p3 = scmp.lt.s32.totalorder %s1030_s30, %s1030_s30 }
  0x5f   :  { %p1037_p4 = por %p1036_p3, %p1035_p2 }
  0x61   :  { %p1038_p5 = pnand %p1037_p4, %p1031_p1 }
  0x63   :  { %1041 = shalt.err (!%p1038_p5)
}
  0x64   :  { %97 = dma.hbm_to_vmem [thread:$0]  %s1236_s9, 2048, %s92_s2, [#allocation11], %s1057_s4, %s1057_s4, %s1058_s27  }
  0x65   :  { %1042 = dma.done.wait [#allocation3], 128  }
  0x66   :  { %1043 = vsyncadd [#allocation3], 4294967168 }
  0x67   :  { %1044 = dma.done.wait [#allocation5], 9216  }
  0x68   :  { %1045 = vsyncadd [#allocation5], 4294958080 }
  0x69   :  { %1046 = dma.done.wait [#allocation8], 5120  }
  0x6a   :  { %1047 = vsyncadd [#allocation8], 4294962176 }
  0x6b   :  { %1048 = dma.done.wait [#allocation11], 2048  }
  0x6c   :  { %1049 = vsyncadd [#allocation11], 4294965248  ;;  %v1060_v0 = vmov 0.0   ;;  %v120_v1 = vld [vmem:[#allocation4 + $0x8] sm:$0xff]  ;;  %v122_v2 = vld [vmem:[#allocation4 + $0x18] sm:$0xff]  ;;  %vm139_vm0 = vcmask 261120  }
  0x6d   :  { %207 = vmatprep.mubr.f32.mxu1 %v1060_v0  ;;  %435 = vmatprep.mubr.f32.mxu0 %v1060_v0  ;;  %v119_v3 = vld [vmem:[#allocation4] sm:$0xff]  ;;  %v761_v4 = vpack.c.bf16 %v122_v2, %v120_v1  ;;  %v121_v5 = vld [vmem:[#allocation4 + $0x10] sm:$0xff]  ;;  %v124_v6 = vld [vmem:[#allocation4 + $0x28] sm:$0xff]  ;;  %vm1062_vm1 = vmmov 0  }
  0x6e   :  { %v126_v7 = vld [vmem:[#allocation4 + $0x38] sm:$0xff]  ;;  %v763_v8 = vpack.c.bf16 %v121_v5, %v119_v3  ;;  %v123_v10 = vld [vmem:[#allocation4 + $0x20] sm:$0xff]  ;;  %v125_v11 = vld [vmem:[#allocation4 + $0x30] sm:$0xff] }
  0x6f   :  { %v765_v9 = vpack.c.bf16 %v126_v7, %v124_v6  ;;  %762 = vmatprep.subr.bf16.mxu1 %v761_v4  ;;  %v217_v12 = vld [vmem:[#allocation6 + $0x8] sm:$0xff]  ;;  %v219_v13 = vld [vmem:[#allocation6 + $0x18] sm:$0xff]  ;;  %v767_v14 = vpack.c.bf16 %v125_v11, %v123_v10  ;;  %v216_v16 = vld [vmem:[#allocation6] sm:$0xff] }
  0x70   :  { %764 = vmatpush1.bf16.msra.mxu1 %v763_v8  ;;  %v769_v15 = vpack.c.bf16 %v219_v13, %v217_v12  ;;  %v218_v17 = vld [vmem:[#allocation6 + $0x10] sm:$0xff]  ;;  %v221_v18 = vld [vmem:[#allocation6 + $0x28] sm:$0xff]  ;;  %v223_v19 = vld [vmem:[#allocation6 + $0x38] sm:$0xff] }
  0x71   :  { %766 = vmatprep.subr.bf16.mxu1 %v765_v9  ;;  %v118_v20 = vld [vmem:[%s1228_s1] sm:$0x1]  ;;  %v771_v21 = vpack.c.bf16 %v218_v17, %v216_v16  ;;  %v773_v22 = vpack.c.bf16 %v223_v19, %v221_v18  ;;  %v220_v23 = vld [vmem:[#allocation6 + $0x20] sm:$0xff]  ;;  %v222_v24 = vld [vmem:[#allocation6 + $0x30] sm:$0xff] }
  0x72   :  { %v225_v25 = vld [vmem:[#allocation6 + $0x48] sm:$0xff]  ;;  %v227_v26 = vld [vmem:[#allocation6 + $0x58] sm:$0xff]  ;;  %v775_v27 = vpack.c.bf16 %v222_v24, %v220_v23  ;;  %v224_v29 = vld [vmem:[#allocation6 + $0x40] sm:$0xff] }
  0x73   :  { %v777_v28 = vpack.c.bf16 %v227_v26, %v225_v25  ;;  %v226_v30 = vld [vmem:[#allocation6 + $0x50] sm:$0xff]  ;;  %v229_v31 = vld [vmem:[#allocation6 + $0x68] sm:$0xff]  ;;  %v231_v32 = vld [vmem:[#allocation6 + $0x78] sm:$0xff] }
  0x74   :  { %768 = vmatpush1.bf16.msra.mxu1 %v767_v14  ;;  %v779_v33 = vpack.c.bf16 %v226_v30, %v224_v29  ;;  %v781_v34 = vpack.c.bf16 %v231_v32, %v229_v31  ;;  %v228_v35 = vld [vmem:[#allocation6 + $0x60] sm:$0xff]  ;;  %v230_v36 = vld [vmem:[#allocation6 + $0x70] sm:$0xff]  ;;  %v233_v37 = vld [vmem:[#allocation6 + $0x88] sm:$0xff] }
  0x75   :  { %770 = vmatprep.subr.bf16.mxu1 %v769_v15  ;;  %v235_v38 = vld [vmem:[#allocation6 + $0x98] sm:$0xff]  ;;  %v783_v39 = vpack.c.bf16 %v230_v36, %v228_v35  ;;  %v232_v41 = vld [vmem:[#allocation6 + $0x80] sm:$0xff]  ;;  %v234_v42 = vld [vmem:[#allocation6 + $0x90] sm:$0xff] }
  0x76   :  { %v785_v40 = vpack.c.bf16 %v235_v38, %v233_v37  ;;  %v237_v43 = vld [vmem:[#allocation6 + $0xa8] sm:$0xff]  ;;  %v239_v44 = vld [vmem:[#allocation6 + $0xb8] sm:$0xff]  ;;  %v787_v45 = vpack.c.bf16 %v234_v42, %v232_v41  ;;  %v236_v47 = vld [vmem:[#allocation6 + $0xa0] sm:$0xff] }
  0x77   :  { %670 = vmatmul.mubr.msk.f32.vlgmr.msra.gmra.mrb[0].mxu1 %vm139_vm0, %v118_v20  ;;  %v789_v46 = vpack.c.bf16 %v239_v44, %v237_v43  ;;  %v238_v48 = vld [vmem:[#allocation6 + $0xb0] sm:$0xff]  ;;  %v241_v49 = vld [vmem:[#allocation6 + $0xc8] sm:$0xff]  ;;  %v243_v50 = vld [vmem:[#allocation6 + $0xd8] sm:$0xff] }
  0x78   :  { %772 = vmatpush1.bf16.msra.mxu1 %v771_v21  ;;  %v791_v51 = vpack.c.bf16 %v238_v48, %v236_v47  ;;  %v793_v52 = vpack.c.bf16 %v243_v50, %v241_v49  ;;  %v240_v53 = vld [vmem:[#allocation6 + $0xc0] sm:$0xff]  ;;  %v242_v54 = vld [vmem:[#allocation6 + $0xd0] sm:$0xff]  ;;  %v245_v55 = vld [vmem:[#allocation6 + $0xe8] sm:$0xff] }
  0x79   :  { %774 = vmatprep.subr.bf16.mxu1 %v773_v22  ;;  %v247_v56 = vld [vmem:[#allocation6 + $0xf8] sm:$0xff]  ;;  %v795_v57 = vpack.c.bf16 %v242_v54, %v240_v53  ;;  %v244_v59 = vld [vmem:[#allocation6 + $0xe0] sm:$0xff]  ;;  %v246_v60 = vld [vmem:[#allocation6 + $0xf0] sm:$0xff] }
  0x7a   :  { %v797_v58 = vpack.c.bf16 %v247_v56, %v245_v55  ;;  %v249_v61 = vld [vmem:[#allocation6 + $0x108] sm:$0xff]  ;;  %v251_v62 = vld [vmem:[#allocation6 + $0x118] sm:$0xff]  ;;  %v799_v63 = vpack.c.bf16 %v246_v60, %v244_v59  ;;  %v248_v2 = vld [vmem:[#allocation6 + $0x100] sm:$0xff] }
  0x7b   :  { %v801_v1 = vpack.c.bf16 %v251_v62, %v249_v61  ;;  %v250_v3 = vld [vmem:[#allocation6 + $0x110] sm:$0xff]  ;;  %v253_v4 = vld [vmem:[#allocation6 + $0x128] sm:$0xff]  ;;  %v255_v5 = vld [vmem:[#allocation6 + $0x138] sm:$0xff] }
  0x7c   :  { %776 = vmatpush1.bf16.msra.mxu1 %v775_v27  ;;  %v803_v6 = vpack.c.bf16 %v250_v3, %v248_v2  ;;  %v805_v7 = vpack.c.bf16 %v255_v5, %v253_v4  ;;  %v252_v8 = vld [vmem:[#allocation6 + $0x120] sm:$0xff]  ;;  %v254_v9 = vld [vmem:[#allocation6 + $0x130] sm:$0xff]  ;;  %v257_v10 = vld [vmem:[#allocation6 + $0x148] sm:$0xff] }
  0x7d   :  { %778 = vmatprep.subr.bf16.mxu1 %v777_v28  ;;  %v259_v11 = vld [vmem:[#allocation6 + $0x158] sm:$0xff]  ;;  %v807_v12 = vpack.c.bf16 %v254_v9, %v252_v8  ;;  %v256_v14 = vld [vmem:[#allocation6 + $0x140] sm:$0xff]  ;;  %v258_v15 = vld [vmem:[#allocation6 + $0x150] sm:$0xff] }
  0x7e   :  { %v809_v13 = vpack.c.bf16 %v259_v11, %v257_v10  ;;  %v261_v16 = vld [vmem:[#allocation6 + $0x168] sm:$0xff]  ;;  %v263_v17 = vld [vmem:[#allocation6 + $0x178] sm:$0xff]  ;;  %v811_v18 = vpack.c.bf16 %v258_v15, %v256_v14  ;;  %v260_v20 = vld [vmem:[#allocation6 + $0x160] sm:$0xff] }
  0x7f   :  { %v813_v19 = vpack.c.bf16 %v263_v17, %v261_v16  ;;  %v262_v21 = vld [vmem:[#allocation6 + $0x170] sm:$0xff]  ;;  %v265_v22 = vld [vmem:[#allocation6 + $0x188] sm:$0xff]  ;;  %v267_v23 = vld [vmem:[#allocation6 + $0x198] sm:$0xff] }
  0x80   :  { %780 = vmatpush1.bf16.msra.mxu1 %v779_v33  ;;  %v815_v24 = vpack.c.bf16 %v262_v21, %v260_v20  ;;  %v817_v25 = vpack.c.bf16 %v267_v23, %v265_v22  ;;  %v264_v26 = vld [vmem:[#allocation6 + $0x180] sm:$0xff]  ;;  %v266_v27 = vld [vmem:[#allocation6 + $0x190] sm:$0xff]  ;;  %v269_v28 = vld [vmem:[#allocation6 + $0x1a8] sm:$0xff] }
  0x81   :  { %782 = vmatprep.subr.bf16.mxu1 %v781_v34  ;;  %v271_v29 = vld [vmem:[#allocation6 + $0x1b8] sm:$0xff]  ;;  %v819_v30 = vpack.c.bf16 %v266_v27, %v264_v26  ;;  %v268_v32 = vld [vmem:[#allocation6 + $0x1a0] sm:$0xff]  ;;  %v270_v33 = vld [vmem:[#allocation6 + $0x1b0] sm:$0xff] }
  0x82   :  { %v821_v31 = vpack.c.bf16 %v271_v29, %v269_v28  ;;  %v273_v34 = vld [vmem:[#allocation6 + $0x1c8] sm:$0xff]  ;;  %v275_v35 = vld [vmem:[#allocation6 + $0x1d8] sm:$0xff]  ;;  %v823_v36 = vpack.c.bf16 %v270_v33, %v268_v32  ;;  %v272_v38 = vld [vmem:[#allocation6 + $0x1c0] sm:$0xff] }
  0x83   :  { %v825_v37 = vpack.c.bf16 %v275_v35, %v273_v34  ;;  %v355_v42 = vld [vmem:[#allocation7 + $0x18] sm:$0xff]  ;;  %v352_v43 = vld [vmem:[#allocation7] sm:$0xff]  ;;  %v354_v44 = vld [vmem:[#allocation7 + $0x10] sm:$0xff] }
  0x84   :  { %784 = vmatpush1.bf16.msra.mxu1 %v783_v39  ;;  %v274_v39 = vld [vmem:[#allocation6 + $0x1d0] sm:$0xff]  ;;  %v277_v47 = vld [vmem:[#allocation6 + $0x1e8] sm:$0xff]  ;;  %v279_v48 = vld [vmem:[#allocation6 + $0x1f8] sm:$0xff] }
  0x85   :  { %786 = vmatprep.subr.bf16.mxu1 %v785_v40  ;;  %v353_v40 = vld [vmem:[#allocation7 + $0x8] sm:$0xff]  ;;  %v827_v41 = vpack.c.bf16 %v274_v39, %v272_v38  ;;  %v829_v49 = vpack.c.bf16 %v279_v48, %v277_v47  ;;  %v276_v50 = vld [vmem:[#allocation6 + $0x1e0] sm:$0xff]  ;;  %v359_v54 = vld [vmem:[#allocation7 + $0x38] sm:$0xff] }
  0x86   :  { %v356_v55 = vld [vmem:[#allocation7 + $0x20] sm:$0xff]  ;;  %v358_v56 = vld [vmem:[#allocation7 + $0x30] sm:$0xff]  ;;  %v351_v59 = vld [vmem:[#allocation2] sm:$0xff] }
  0x87   :  { %v474_v60 = vld [vmem:[#allocation9 + $0x80] sm:$0xff]  ;;  %v475_v61 = vld [vmem:[#allocation9 + $0x88] sm:$0xff]  ;;  %v476_v2 = vld [vmem:[#allocation9 + $0x90] sm:$0xff] }
  0x88   :  { %788 = vmatpush1.bf16.msra.mxu1 %v787_v45  ;;  %v833_v45 = vpack.c.bf16 %v355_v42, %v353_v40  ;;  %v841_v62 = vpack.c.bf16 %v475_v61, %v474_v60  ;;  %v477_v4 = vld [vmem:[#allocation9 + $0x98] sm:$0xff]  ;;  %v460_v5 = vld [vmem:[#allocation9 + $0x10] sm:$0xff]  ;;  %v478_v8 = vld [vmem:[#allocation9 + $0xa0] sm:$0xff]  ;;  %v1061_v60 = vmov 0.0|0.0  }
  0x89   :  { %790 = vmatprep.subr.bf16.mxu1 %v789_v46  ;;  %v835_v46 = vpack.c.bf16 %v354_v44, %v352_v43  ;;  %v479_v9 = vld [vmem:[#allocation9 + $0xa8] sm:$0xff]  ;;  %v480_v14 = vld [vmem:[#allocation9 + $0xb0] sm:$0xff]  ;;  %v481_v15 = vld [vmem:[#allocation9 + $0xb8] sm:$0xff] }
  0x8a   :  { %834 = vmatprep.subr.bf16.mxu0 %v833_v45  ;;  %v849_v11 = vpack.c.bf16 %v479_v9, %v478_v8  ;;  %v853_v17 = vpack.c.bf16 %v481_v15, %v480_v14  ;;  %v482_v20 = vld [vmem:[#allocation9 + $0xc0] sm:$0xff]  ;;  %v483_v21 = vld [vmem:[#allocation9 + $0xc8] sm:$0xff]  ;;  %v484_v26 = vld [vmem:[#allocation9 + $0xd0] sm:$0xff] }
  0x8b   :  { %836 = vmatpush1.bf16.msra.mxu0 %v835_v46  ;;  %v857_v23 = vpack.c.bf16 %v483_v21, %v482_v20  ;;  %v485_v27 = vld [vmem:[#allocation9 + $0xd8] sm:$0xff]  ;;  %v468_v43 = vld [vmem:[#allocation9 + $0x50] sm:$0xff]  ;;  %v486_v46 = vld [vmem:[#allocation9 + $0xe0] sm:$0xff] }
  0x8c   :  { %792 = vmatpush1.bf16.msra.mxu1 %v791_v51  ;;  %v278_v51 = vld [vmem:[#allocation6 + $0x1f0] sm:$0xff]  ;;  %v861_v29 = vpack.c.bf16 %v485_v27, %v484_v26  ;;  %v127_v33 = vld [vmem:[%s1230_s3] sm:$0x3]  ;;  %v487_v47 = vld [vmem:[#allocation9 + $0xe8] sm:$0xff] }
  0x8d   :  { %794 = vmatprep.subr.bf16.mxu1 %v793_v52  ;;  %v357_v52 = vld [vmem:[#allocation7 + $0x28] sm:$0xff]  ;;  %v831_v53 = vpack.c.bf16 %v278_v51, %v276_v50  ;;  %v469_v44 = vld [vmem:[#allocation9 + $0x58] sm:$0xff]  ;;  %v865_v48 = vpack.c.bf16 %v487_v47, %v486_v46  ;;  %v568_v8 = vld [vmem:[#allocation10] sm:$0xff] }
  0x8e   :  { %v863_v45 = vpack.c.bf16 %v469_v44, %v468_v43  ;;  %v471_v50 = vld [vmem:[#allocation9 + $0x68] sm:$0xff]  ;;  %v442_v61 = vld [vmem:[%s1233_s6] sm:$0x3]  ;;  %v570_v14 = vld [vmem:[#allocation10 + $0x10] sm:$0xff] }
  0x8f   :  { %v569_v9 = vld [vmem:[#allocation10 + $0x8] sm:$0xff]  ;;  %v571_v15 = vld [vmem:[#allocation10 + $0x18] sm:$0xff]  ;;  %v574_v20 = vld [vmem:[#allocation10 + $0x30] sm:$0xff] }
  0x90   :  { %796 = vmatpush1.bf16.msra.mxu1 %v795_v57  ;;  %v837_v57 = vpack.c.bf16 %v359_v54, %v357_v52  ;;  %v488_v54 = vld [vmem:[#allocation9 + $0xf0] sm:$0xff]  ;;  %v575_v21 = vld [vmem:[#allocation10 + $0x38] sm:$0xff] }
  0x91   :  { %798 = vmatprep.subr.bf16.mxu1 %v797_v58  ;;  %v839_v58 = vpack.c.bf16 %v358_v56, %v356_v55  ;;  %v489_v55 = vld [vmem:[#allocation9 + $0xf8] sm:$0xff]  ;;  %v578_v26 = vld [vmem:[#allocation10 + $0x50] sm:$0xff] }
  0x92   :  { %838 = vmatprep.subr.bf16.mxu0 %v837_v57  ;;  %v869_v56 = vpack.c.bf16 %v489_v55, %v488_v54  ;;  %v472_v57 = vld [vmem:[#allocation9 + $0x70] sm:$0xff]  ;;  %v579_v27 = vld [vmem:[#allocation10 + $0x58] sm:$0xff] }
  0x93   :  { %840 = vmatpush1.bf16.msra.mxu0 %v839_v58  ;;  %v473_v58 = vld [vmem:[#allocation9 + $0x78] sm:$0xff] }
  0x94   :  { %800 = vmatpush1.bf16.msra.mxu1 %v799_v63  ;;  %v458_v63 = vld [vmem:[#allocation9] sm:$0xff]  ;;  %842 = vmatprep.subr.bf16.mxu0 %v841_v62 }
  0x95   :  { %802 = vmatprep.subr.bf16.mxu1 %v801_v1  ;;  %v459_v1 = vld [vmem:[#allocation9 + $0x8] sm:$0xff] }
  0x96   :  { %671 = vmatmul.mubr.msk.f32.vlgmr.msra.gmra.mrb[0].mxu0 %vm139_vm0, %v351_v59  ;;  %v843_v3 = vpack.c.bf16 %v459_v1, %v458_v63  ;;  %v871_v59 = vpack.c.bf16 %v473_v58, %v472_v57 }
  0x98   :  { %804 = vmatpush1.bf16.msra.mxu1 %v803_v6  ;;  %v461_v6 = vld [vmem:[#allocation9 + $0x18] sm:$0xff]  ;;  %844 = vmatpush3.bf16.msra.mxu0 %v843_v3 }
  0x99   :  { %806 = vmatprep.subr.bf16.mxu1 %v805_v7  ;;  %v845_v7 = vpack.c.bf16 %v477_v4, %v476_v2  ;;  %v847_v10 = vpack.c.bf16 %v461_v6, %v460_v5 }
  0x9b   :  { %846 = vmatprep.subr.bf16.mxu0 %v845_v7 }
  0x9c   :  { %808 = vmatpush1.bf16.msra.mxu1 %v807_v12  ;;  %v462_v12 = vld [vmem:[#allocation9 + $0x20] sm:$0xff]  ;;  %848 = vmatpush3.bf16.msra.mxu0 %v847_v10 }
  0x9d   :  { %810 = vmatprep.subr.bf16.mxu1 %v809_v13  ;;  %v463_v13 = vld [vmem:[#allocation9 + $0x28] sm:$0xff]  ;;  %850 = vmatprep.subr.bf16.mxu0 %v849_v11 }
  0x9e   :  { %v851_v16 = vpack.c.bf16 %v463_v13, %v462_v12  ;;  %v874_v12 = vpack.c.bf16 %v569_v9, %v568_v8 }
  0xa0   :  { %812 = vmatpush1.bf16.msra.mxu1 %v811_v18  ;;  %v464_v18 = vld [vmem:[#allocation9 + $0x30] sm:$0xff]  ;;  %852 = vmatpush3.bf16.msra.mxu0 %v851_v16  ;;  %v877_v16 = vpack.c.bf16 %v571_v15, %v570_v14 }
  0xa1   :  { %814 = vmatprep.subr.bf16.mxu1 %v813_v19  ;;  %v465_v19 = vld [vmem:[#allocation9 + $0x38] sm:$0xff]  ;;  %854 = vmatprep.subr.bf16.mxu0 %v853_v17  ;;  %v572_v17 = vld [vmem:[#allocation10 + $0x20] sm:$0xff] }
  0xa2   :  { %v855_v22 = vpack.c.bf16 %v465_v19, %v464_v18  ;;  %v573_v18 = vld [vmem:[#allocation10 + $0x28] sm:$0xff] }
  0xa3   :  { %v880_v19 = vpack.c.bf16 %v573_v18, %v572_v17 }
  0xa4   :  { %816 = vmatpush1.bf16.msra.mxu1 %v815_v24  ;;  %v466_v24 = vld [vmem:[#allocation9 + $0x40] sm:$0xff]  ;;  %856 = vmatpush3.bf16.msra.mxu0 %v855_v22  ;;  %v883_v22 = vpack.c.bf16 %v575_v21, %v574_v20 }
  0xa5   :  { %818 = vmatprep.subr.bf16.mxu1 %v817_v25  ;;  %v467_v25 = vld [vmem:[#allocation9 + $0x48] sm:$0xff]  ;;  %858 = vmatprep.subr.bf16.mxu0 %v857_v23  ;;  %v576_v23 = vld [vmem:[#allocation10 + $0x40] sm:$0xff] }
  0xa6   :  { %v859_v28 = vpack.c.bf16 %v467_v25, %v466_v24  ;;  %v577_v24 = vld [vmem:[#allocation10 + $0x48] sm:$0xff] }
  0xa7   :  { %v886_v25 = vpack.c.bf16 %v577_v24, %v576_v23 }
  0xa8   :  { %820 = vmatpush1.bf16.msra.mxu1 %v819_v30  ;;  %860 = vmatpush3.bf16.msra.mxu0 %v859_v28  ;;  %v129_v30 = vlaneseq  ;;  %v889_v28 = vpack.c.bf16 %v579_v27, %v578_v26 }
  0xa9   :  { %822 = vmatprep.subr.bf16.mxu1 %v821_v31  ;;  %862 = vmatprep.subr.bf16.mxu0 %v861_v29  ;;  %v580_v29 = vld [vmem:[#allocation10 + $0x60] sm:$0xff] }
  0xaa   :  { %v130_v31 = vshrl.u32 %v129_v30, 7  ;;  %v581_v30 = vld [vmem:[#allocation10 + $0x68] sm:$0xff] }
  0xac   :  { %824 = vmatpush1.bf16.msra.mxu1 %v823_v36  ;;  %v131_v32 = vsub.s32 0, %v130_v31  ;;  %v135_v34 = vsub.s32 1, %v130_v31  ;;  %864 = vmatpush3.bf16.msra.mxu0 %v863_v45  ;;  %v892_v31 = vpack.c.bf16 %v581_v30, %v580_v29 }
  0xad   :  { %826 = vmatprep.subr.bf16.mxu1 %v825_v37  ;;  %866 = vmatprep.subr.bf16.mxu0 %v865_v48 }
  0xae   :  { %v132_v35 = vrot.slane %v127_v33, %v131_v32  ;;  %v136_v36 = vrot.slane %v127_v33, %v135_v34  ;;  %v447_v2 = vrot.slane %v442_v61, %v131_v32  ;;  %v451_v4 = vrot.slane %v442_v61, %v135_v34  ;;  %v583_v33 = vld [vmem:[#allocation10 + $0x78] sm:$0xff] }
  0xb0   :  { %828 = vmatpush1.bf16.msra.mxu1 %v827_v41 }
  0xb1   :  { %830 = vmatprep.subr.bf16.mxu1 %v829_v49  ;;  %v470_v49 = vld [vmem:[#allocation9 + $0x60] sm:$0xff] }
  0xb2   :  { %v867_v52 = vpack.c.bf16 %v471_v50, %v470_v49 }
  0xb4   :  { %832 = vmatpush1.bf16.msra.mxu1 %v831_v53  ;;  %868 = vmatpush3.bf16.msra.mxu0 %v867_v52 }
  0xb5   :  { %870 = vmatprep.subr.bf16.mxu0 %v869_v56 }
  0xb8   :  { %872 = vmatpush3.bf16.msra.mxu0 %v871_v59 }
  0xb9   :  { %873 = vmatprep.subr.bf16.mxu0 %v1061_v60 }
 0x14a   :  { %v209_v37 = vpop.f32.mrb[0].mxu1 }
 0x14b   :  { %v210_v38 = vadd.f32 %v209_v37, %v132_v35  ;;  %v211_v39 = vpop.f32.mrb[1].mxu1 }
 0x14c   :  { %v212_v40 = vadd.f32 %v211_v39, %v136_v36  ;;  %v672_v36 = vld [vmem:[%s1235_s8] ss:$0 sm:$0xff] }
 0x14d   :  { %v214_v42 = vmax.f32 %v210_v38, 0.0 }
 0x14e   :  { %v215_v41 = vmax.f32 %v212_v40, 0.0 }
 0x150   :  { %344 = vmatprep.mubr.f32.mxu1 %v215_v41  ;;  %v673_v41 = vld [vmem:[%s1237_s10] ss:$0 sm:$0xff] }
 0x151   :  { %345 = vmatmul.mubr.f32.vlgmr.msra.gmra.mrb[2].mxu1 %v214_v42 }
 0x169   :  { %v437_v51 = vpop.f32.mrb[0].mxu0 }
 0x16a   :  { %v439_v53 = vpop.f32.mrb[1].mxu0 }
 0x224   :  { %v346_v62 = vpop.f32.mrb[2].mxu1 }
 0x225   :  { %v363_v63 = vrot.slane %v346_v62, %v131_v32  ;;  %v348_v1 = vpop.f32.mrb[3].mxu1 }
 0x226   :  { %v367_v3 = vrot.slane %v348_v1, %v131_v32  ;;  %v582_v32 = vld [vmem:[#allocation10 + $0x70] sm:$0xff] }
 0x227   :  { %v438_v5 = vadd.f32 %v437_v51, %v363_v63  ;;  %v895_v34 = vpack.c.bf16 %v583_v33, %v582_v32 }
 0x228   :  { %v440_v6 = vadd.f32 %v439_v53, %v367_v3 }
 0x229   :  { %v454_v7 = vadd.f32 %v447_v2, %v438_v5 }
 0x22a   :  { %v455_v10 = vadd.f32 %v451_v4, %v440_v6 }
 0x22b   :  { %v456_v13 = vmax.f32 %v454_v7, 0.0 }
 0x22c   :  { %v457_v11 = vmax.f32 %v455_v10, 0.0 }
 0x22e   :  { %561 = vmatprep.mubr.f32.mxu0 %v457_v11 }
 0x22f   :  { %562 = vmatmul.mubr.f32.vlgmr.msra.gmra.mrb[2].mxu0 %v456_v13 }
 0x230   :  { %875 = vmatpush3.bf16.msra.mxu0 %v874_v12  ;;  %758 = vmatprep.mubr.msk.f32.mxu0 %vm1062_vm1, %v1060_v0 }
 0x231   :  { %876 = vmatprep.subr.bf16.mxu0 %v1061_v60 }
 0x234   :  { %878 = vmatpush3.bf16.msra.mxu0 %v877_v16 }
 0x235   :  { %879 = vmatprep.subr.bf16.mxu0 %v1061_v60 }
 0x238   :  { %881 = vmatpush3.bf16.msra.mxu0 %v880_v19 }
 0x239   :  { %882 = vmatprep.subr.bf16.mxu0 %v1061_v60 }
 0x23c   :  { %884 = vmatpush3.bf16.msra.mxu0 %v883_v22 }
 0x23d   :  { %885 = vmatprep.subr.bf16.mxu0 %v1061_v60 }
 0x240   :  { %887 = vmatpush3.bf16.msra.mxu0 %v886_v25 }
 0x241   :  { %888 = vmatprep.subr.bf16.mxu0 %v1061_v60 }
 0x244   :  { %890 = vmatpush3.bf16.msra.mxu0 %v889_v28 }
 0x245   :  { %891 = vmatprep.subr.bf16.mxu0 %v1061_v60 }
 0x248   :  { %893 = vmatpush3.bf16.msra.mxu0 %v892_v31 }
 0x249   :  { %894 = vmatprep.subr.bf16.mxu0 %v1061_v60 }
 0x24c   :  { %896 = vmatpush3.bf16.msra.mxu0 %v895_v34 }
 0x302   :  { %v706_v35 = vpop.f32.mrb[2].mxu0 }
 0x303   :  { %v707_v37 = vpop.f32.mrb[3].mxu0 }
 0x304   :  { %v708_v38 = vadd.f32 %v707_v37, %v706_v35 }
 0x306   :  { %v564_v39 = vadd.f32 %v708_v38, %v672_v36 }
 0x308   :  { %v567_v40 = vmax.f32 %v564_v39, 0.0 }
 0x30a   :  { %759 = vmatmul.mubr.f32.vlgmr.msra.gmra.mrb[4].mxu0 %v567_v40 }
 0x3dd   :  { %v657_v42 = vpop.f32.mrb[4].mxu0 }
 0x3de   :  { %v658_v43 = vadd.f32 %v673_v41, %v657_v42  ;;  %v760_v44 = vpop.f32.mrb[5].mxu0 }
 0x3e0   :  { %661 = vst [vmem:[%s1238_s11] sm:$0xff] %v658_v43 }
 0x3e1   :  { %666 = vsyncpa [#allocation3], 1 }
 0x3e2   :  { %667 = vsyncpa [#allocation5], 1 }
 0x3e3   :  { %668 = vsyncpa [#allocation8], 1 }
 0x3e4   :  { %669 = vsyncpa [#allocation11], 1 }

</bundles_post_ra>
